<compile_context>
chip_gen: v5e
topology: v5e:2x2
jax: 0.10.0
libtpu: 0.0.40
codegen_flags: <defaults>
</compile_context>

<pallas_src>
import functools

import jax
import jax.numpy as jnp
from jax.experimental import pallas as pl
from jax.experimental.pallas import tpu as pltpu

EPS = 1e-5


def _pick_row_tile(n, row_bytes, target_bytes):
    """Largest divisor of n whose (tile, C, HW) input block is <= target_bytes."""
    tn = max(1, min(n, target_bytes // max(row_bytes, 1)))
    while n % tn:
        tn -= 1
    return int(tn)


def _gnap_kernel(x_ref, o_ref, csum_ref, csumsq_ref, xnorm_ref, *, n, hw, tn, nt):
    p = pl.program_id(0)   # 0: stats pass, 1: normalize / pool / finalize pass
    i = pl.program_id(1)   # batch-row tile index

    @pl.when(jnp.logical_and(p == 0, i == 0))
    def _init():
        csum_ref[...] = jnp.zeros_like(csum_ref)
        csumsq_ref[...] = jnp.zeros_like(csumsq_ref)
        xnorm_ref[...] = jnp.zeros_like(xnorm_ref)

    x = x_ref[...].astype(jnp.float32)                         # (tn, C, HW)

    @pl.when(p == 0)
    def _stats():
        # One-pass BatchNorm2d statistics: per-channel sum and sum of squares.
        s = jnp.sum(x, axis=0, keepdims=True)                  # (1, C, HW)
        ss = jnp.sum(x * x, axis=0, keepdims=True)             # (1, C, HW)
        csum_ref[...] += jnp.sum(s, axis=2, keepdims=True)     # (1, C, 1)
        csumsq_ref[...] += jnp.sum(ss, axis=2, keepdims=True)  # (1, C, 1)

    @pl.when(p == 1)
    def _pool():
        inv_cnt = 1.0 / float(n * hw)
        mean1 = csum_ref[...] * inv_cnt                        # (1, C, 1)
        var1 = csumsq_ref[...] * inv_cnt - mean1 * mean1       # biased variance
        inv_std1 = jax.lax.rsqrt(var1 + EPS)                   # (1, C, 1)

        xh = (x - mean1) * inv_std1                            # (tn, C, HW)
        sumsq = jnp.sum(xh * xh, axis=1, keepdims=True)        # (tn, 1, HW)
        # 1 / ||xh||  (inf when the norm is exactly 0, matching torch's n/0).
        r = jax.lax.rsqrt(sumsq)                               # (tn, 1, HW)

        # Running sum of ||xh|| over all (n, hw) locations (||xh|| = sumsq*r).
        nrm = jnp.sum(sumsq * r, axis=2, keepdims=True)        # (tn, 1, 1)
        xnorm_ref[...] += jnp.sum(nrm, axis=0, keepdims=True)  # (1, 1, 1)

        # pooled[n, c] = (mean(||xh||)/HW) * sum_s xh[n, c, s] / ||xh[n, s]||
        # Store everything except the global mean(||xh||)/HW factor now.
        raw = jnp.sum(xh * r, axis=2)                          # (tn, C)
        row = pl.multiple_of(i * tn, tn)
        o_ref[pl.ds(row, tn), :] = raw

        @pl.when(i == nt - 1)
        def _finalize():
            # Global mean(||xh||) factors out of the pooled result.
            scale = xnorm_ref[...][0] * (inv_cnt / float(hw))  # (1, 1)
            pooled = o_ref[...] * scale                        # (N, C)
            # BatchNorm1d(affine=False), training-mode (biased) batch stats.
            inv_n = 1.0 / float(n)
            mean2 = jnp.sum(pooled, axis=0, keepdims=True) * inv_n
            var2 = (jnp.sum(pooled * pooled, axis=0, keepdims=True) * inv_n
                    - mean2 * mean2)
            o_ref[...] = (pooled - mean2) * jax.lax.rsqrt(var2 + EPS)


def gnap_forward(x_nchw, *, tile_target_bytes=2 << 20):
    """x_nchw: (N, C, H, W) float -> (N, C) float32 features (training mode)."""
    n, c, h, w = x_nchw.shape
    hw = h * w
    # Free reshape (NCHW is already channel-major): channels stay on the
    # sublane axis, spatial maps to the 128-lane axis.  No wrapper transpose.
    x = x_nchw.reshape(n, c, hw)

    itemsize = jnp.dtype(x.dtype).itemsize
    tn = _pick_row_tile(n, c * hw * itemsize, tile_target_bytes)
    nt = n // tn

    kernel = functools.partial(_gnap_kernel, n=n, hw=hw, tn=tn, nt=nt)

    tile_raw = tn * c * hw * itemsize
    tile_f32 = tn * c * hw * 4
    vmem_limit = int(min(64 * 1024 * 1024,
                         max(32 * 1024 * 1024,
                             2 * tile_raw + 6 * tile_f32 + n * c * 4 + (8 << 20))))
    cost = pl.CostEstimate(
        flops=int(12 * n * hw * c + 10 * n * c),
        transcendentals=int(n * hw + 2 * c),
        bytes_accessed=int(2 * n * hw * c * itemsize + n * c * 4),
    )

    return pl.pallas_call(
        kernel,
        out_shape=jax.ShapeDtypeStruct((n, c), jnp.float32),
        grid_spec=pltpu.PrefetchScalarGridSpec(
            num_scalar_prefetch=0,
            grid=(2, nt),                                   # (pass, batch tile)
            in_specs=[pl.BlockSpec((tn, c, hw), lambda p, i: (i, 0, 0))],
            out_specs=pl.BlockSpec((n, c), lambda p, i: (0, 0)),
            scratch_shapes=[
                pltpu.VMEM((1, c, 1), jnp.float32),   # per-channel sum
                pltpu.VMEM((1, c, 1), jnp.float32),   # per-channel sum of squares
                pltpu.VMEM((1, 1, 1), jnp.float32),   # running sum of ||xh||
            ],
        ),
        compiler_params=pltpu.CompilerParams(
            dimension_semantics=("arbitrary", "arbitrary"),
            vmem_limit_bytes=vmem_limit,
        ),
        cost_estimate=cost,
    )(x)


def gnap_reference(x_nchw):
    """Pure-JAX reference mirroring the PyTorch forward (training mode)."""
    x = x_nchw.astype(jnp.float32)
    mean1 = jnp.mean(x, axis=(0, 2, 3), keepdims=True)
    var1 = jnp.mean((x - mean1) ** 2, axis=(0, 2, 3), keepdims=True)
    xh = (x - mean1) / jnp.sqrt(var1 + EPS)
    x_norm = jnp.linalg.norm(xh, ord=2, axis=1, keepdims=True)
    x_norm_mean = jnp.mean(x_norm)
    xw = xh * (x_norm_mean / x_norm)
    pooled = jnp.mean(xw, axis=(2, 3))
    mean2 = jnp.mean(pooled, axis=0, keepdims=True)
    var2 = jnp.mean((pooled - mean2) ** 2, axis=0, keepdims=True)
    return (pooled - mean2) / jnp.sqrt(var2 + EPS)


if __name__ == "__main__":
    # Small shape consistent with the module: batch=2, channels=4, spatial=16x16.
    x1 = jax.random.normal(jax.random.PRNGKey(0), (2, 4, 16, 16), dtype=jnp.float32)
    out1 = jax.block_until_ready(gnap_forward(x1))
    ref1 = gnap_reference(x1)
    assert out1.shape == (2, 4)
    err1 = float(jnp.max(jnp.abs(out1 - ref1)))
    assert err1 < 2e-4, f"max abs err: {err1}"

    # Exercise the multi-tile two-pass path (nt > 1) with a tiny forced tile:
    # per-row = 4*256*4 = 4096 B, target 8 KiB -> tile of 2 rows, 4 tiles.
    x2 = jax.random.normal(jax.random.PRNGKey(0), (8, 4, 16, 16), dtype=jnp.float32)
    out2 = jax.block_until_ready(gnap_forward(x2, tile_target_bytes=8 * 1024))
    ref2 = gnap_reference(x2)
    assert out2.shape == (8, 4)
    err2 = float(jnp.max(jnp.abs(out2 - ref2)))
    assert err2 < 2e-4, f"max abs err: {err2}"

    print("KERNEL_OK")
</pallas_src>

<mosaic_0001>
module attributes {stable_mosaic.version = 11 : i64} {
  func.func @_gnap_kernel(%arg0: i32, %arg1: i32, %arg2: memref<2x4x256xf32, #tpu.memory_space<vmem>>, %arg3: memref<2x4xf32, #tpu.memory_space<vmem>>, %arg4: memref<1x4x1xf32, #tpu.memory_space<vmem>>, %arg5: memref<1x4x1xf32, #tpu.memory_space<vmem>>, %arg6: memref<1x1x1xf32, #tpu.memory_space<vmem>>) attributes {dimension_semantics = [#tpu.dimension_semantics<arbitrary>, #tpu.dimension_semantics<arbitrary>], iteration_bounds = array<i64: 2, 1>, scalar_prefetch = 0 : i64, scratch_operands = 3 : i64, tpu.core_type = #tpu.core_type<tc>, window_params = [{transform_indices = @transform_0, window_bounds = array<i64: 2, 4, 256>}, {pipeline_mode = #tpu.pipeline_mode<synchronous>, transform_indices = @transform_1, window_bounds = array<i64: 2, 4>}]} {
    %c0_i32 = arith.constant 0 : i32
    %0 = arith.cmpi eq, %arg0, %c0_i32 : i32
    %c0_i32_0 = arith.constant 0 : i32
    %1 = arith.cmpi eq, %arg1, %c0_i32_0 : i32
    %2 = arith.andi %0, %1 : i1
    %3 = arith.extui %2 : i1 to i32
    %c0_i32_1 = arith.constant 0 : i32
    %4 = arith.cmpi ne, %3, %c0_i32_1 : i32
    scf.if %4 {
      %cst = arith.constant 0.000000e+00 : f32
      %12 = vector.broadcast %cst : f32 to vector<1x4x1xf32>
      %c0_7 = arith.constant 0 : index
      %c0_8 = arith.constant 0 : index
      %c0_9 = arith.constant 0 : index
      %13 = vector.load %arg4[%c0_7, %c0_8, %c0_9] : memref<1x4x1xf32, #tpu.memory_space<vmem>>, vector<1x4x1xf32>
      tpu.vector_store %arg4[%c0_7, %c0_8, %c0_9], %12 {strides = array<i32>} : memref<1x4x1xf32, #tpu.memory_space<vmem>>, vector<1x4x1xf32>,
      %cst_10 = arith.constant 0.000000e+00 : f32
      %14 = vector.broadcast %cst_10 : f32 to vector<1x4x1xf32>
      %c0_11 = arith.constant 0 : index
      %c0_12 = arith.constant 0 : index
      %c0_13 = arith.constant 0 : index
      %15 = vector.load %arg5[%c0_11, %c0_12, %c0_13] : memref<1x4x1xf32, #tpu.memory_space<vmem>>, vector<1x4x1xf32>
      tpu.vector_store %arg5[%c0_11, %c0_12, %c0_13], %14 {strides = array<i32>} : memref<1x4x1xf32, #tpu.memory_space<vmem>>, vector<1x4x1xf32>,
      %cst_14 = arith.constant 0.000000e+00 : f32
      %16 = vector.broadcast %cst_14 : f32 to vector<1x1x1xf32>
      %c0_15 = arith.constant 0 : index
      %c0_16 = arith.constant 0 : index
      %c0_17 = arith.constant 0 : index
      %17 = vector.load %arg6[%c0_15, %c0_16, %c0_17] : memref<1x1x1xf32, #tpu.memory_space<vmem>>, vector<1x1x1xf32>
      tpu.vector_store %arg6[%c0_15, %c0_16, %c0_17], %16 {strides = array<i32>} : memref<1x1x1xf32, #tpu.memory_space<vmem>>, vector<1x1x1xf32>,
    } else {
    }
    %c0 = arith.constant 0 : index
    %c0_2 = arith.constant 0 : index
    %c0_3 = arith.constant 0 : index
    %5 = vector.load %arg2[%c0, %c0_2, %c0_3] : memref<2x4x256xf32, #tpu.memory_space<vmem>>, vector<2x4x256xf32>
    %c0_i32_4 = arith.constant 0 : i32
    %6 = arith.cmpi eq, %arg0, %c0_i32_4 : i32
    %7 = arith.extui %6 : i1 to i32
    %c0_i32_5 = arith.constant 0 : i32
    %8 = arith.cmpi ne, %7, %c0_i32_5 : i32
    scf.if %8 {
      %cst = arith.constant dense<0.000000e+00> : vector<4x256xf32>
      %12 = vector.multi_reduction <add>, %5, %cst [0] : vector<2x4x256xf32> to vector<4x256xf32>
      %13 = vector.shape_cast %12 : vector<4x256xf32> to vector<1x4x256xf32>
      %14 = arith.mulf %5, %5 : vector<2x4x256xf32>
      %cst_7 = arith.constant dense<0.000000e+00> : vector<4x256xf32>
      %15 = vector.multi_reduction <add>, %14, %cst_7 [0] : vector<2x4x256xf32> to vector<4x256xf32>
      %16 = vector.shape_cast %15 : vector<4x256xf32> to vector<1x4x256xf32>
      %c0_8 = arith.constant 0 : index
      %c0_9 = arith.constant 0 : index
      %c0_10 = arith.constant 0 : index
      %17 = vector.load %arg4[%c0_8, %c0_9, %c0_10] : memref<1x4x1xf32, #tpu.memory_space<vmem>>, vector<1x4x1xf32>
      %cst_11 = arith.constant dense<0.000000e+00> : vector<1x4xf32>
      %18 = vector.multi_reduction <add>, %13, %cst_11 [2] : vector<1x4x256xf32> to vector<1x4xf32>
      %19 = vector.shape_cast %18 : vector<1x4xf32> to vector<1x4x1xf32>
      %20 = arith.addf %17, %19 : vector<1x4x1xf32>
      %c0_12 = arith.constant 0 : index
      %c0_13 = arith.constant 0 : index
      %c0_14 = arith.constant 0 : index
      %21 = vector.load %arg4[%c0_12, %c0_13, %c0_14] : memref<1x4x1xf32, #tpu.memory_space<vmem>>, vector<1x4x1xf32>
      tpu.vector_store %arg4[%c0_12, %c0_13, %c0_14], %20 {strides = array<i32>} : memref<1x4x1xf32, #tpu.memory_space<vmem>>, vector<1x4x1xf32>,
      %c0_15 = arith.constant 0 : index
      %c0_16 = arith.constant 0 : index
      %c0_17 = arith.constant 0 : index
      %22 = vector.load %arg5[%c0_15, %c0_16, %c0_17] : memref<1x4x1xf32, #tpu.memory_space<vmem>>, vector<1x4x1xf32>
      %cst_18 = arith.constant dense<0.000000e+00> : vector<1x4xf32>
      %23 = vector.multi_reduction <add>, %16, %cst_18 [2] : vector<1x4x256xf32> to vector<1x4xf32>
      %24 = vector.shape_cast %23 : vector<1x4xf32> to vector<1x4x1xf32>
      %25 = arith.addf %22, %24 : vector<1x4x1xf32>
      %c0_19 = arith.constant 0 : index
      %c0_20 = arith.constant 0 : index
      %c0_21 = arith.constant 0 : index
      %26 = vector.load %arg5[%c0_19, %c0_20, %c0_21] : memref<1x4x1xf32, #tpu.memory_space<vmem>>, vector<1x4x1xf32>
      tpu.vector_store %arg5[%c0_19, %c0_20, %c0_21], %25 {strides = array<i32>} : memref<1x4x1xf32, #tpu.memory_space<vmem>>, vector<1x4x1xf32>,
    } else {
    }
    %c1_i32 = arith.constant 1 : i32
    %9 = arith.cmpi eq, %arg0, %c1_i32 : i32
    %10 = arith.extui %9 : i1 to i32
    %c0_i32_6 = arith.constant 0 : i32
    %11 = arith.cmpi ne, %10, %c0_i32_6 : i32
    scf.if %11 {
      %c0_7 = arith.constant 0 : index
      %c0_8 = arith.constant 0 : index
      %c0_9 = arith.constant 0 : index
      %12 = vector.load %arg4[%c0_7, %c0_8, %c0_9] : memref<1x4x1xf32, #tpu.memory_space<vmem>>, vector<1x4x1xf32>
      %cst = arith.constant 0.001953125 : f32
      %13 = vector.broadcast %cst : f32 to vector<1x4x1xf32>
      %14 = arith.mulf %12, %13 : vector<1x4x1xf32>
      %c0_10 = arith.constant 0 : index
      %c0_11 = arith.constant 0 : index
      %c0_12 = arith.constant 0 : index
      %15 = vector.load %arg5[%c0_10, %c0_11, %c0_12] : memref<1x4x1xf32, #tpu.memory_space<vmem>>, vector<1x4x1xf32>
      %cst_13 = arith.constant 0.001953125 : f32
      %16 = vector.broadcast %cst_13 : f32 to vector<1x4x1xf32>
      %17 = arith.mulf %15, %16 : vector<1x4x1xf32>
      %18 = arith.mulf %14, %14 : vector<1x4x1xf32>
      %19 = arith.subf %17, %18 : vector<1x4x1xf32>
      %cst_14 = arith.constant 9.99999974E-6 : f32
      %20 = vector.broadcast %cst_14 : f32 to vector<1x4x1xf32>
      %21 = arith.addf %19, %20 : vector<1x4x1xf32>
      %22 = math.rsqrt %21 : vector<1x4x1xf32>
      %23 = vector.broadcast %14 : vector<1x4x1xf32> to vector<2x4x256xf32>
      %24 = arith.subf %5, %23 : vector<2x4x256xf32>
      %25 = vector.broadcast %22 : vector<1x4x1xf32> to vector<2x4x256xf32>
      %26 = arith.mulf %24, %25 : vector<2x4x256xf32>
      %27 = arith.mulf %26, %26 : vector<2x4x256xf32>
      %cst_15 = arith.constant dense<0.000000e+00> : vector<2x256xf32>
      %28 = vector.multi_reduction <add>, %27, %cst_15 [1] : vector<2x4x256xf32> to vector<2x256xf32>
      %29 = vector.shape_cast %28 : vector<2x256xf32> to vector<2x1x256xf32>
      %30 = math.rsqrt %29 : vector<2x1x256xf32>
      %31 = arith.mulf %29, %30 : vector<2x1x256xf32>
      %cst_16 = arith.constant dense<0.000000e+00> : vector<2x1xf32>
      %32 = vector.multi_reduction <add>, %31, %cst_16 [2] : vector<2x1x256xf32> to vector<2x1xf32>
      %33 = vector.shape_cast %32 : vector<2x1xf32> to vector<2x1x1xf32>
      %c0_17 = arith.constant 0 : index
      %c0_18 = arith.constant 0 : index
      %c0_19 = arith.constant 0 : index
      %34 = vector.load %arg6[%c0_17, %c0_18, %c0_19] : memref<1x1x1xf32, #tpu.memory_space<vmem>>, vector<1x1x1xf32>
      %cst_20 = arith.constant dense<0.000000e+00> : vector<1x1xf32>
      %35 = vector.multi_reduction <add>, %33, %cst_20 [0] : vector<2x1x1xf32> to vector<1x1xf32>
      %36 = vector.shape_cast %35 : vector<1x1xf32> to vector<1x1x1xf32>
      %37 = arith.addf %34, %36 : vector<1x1x1xf32>
      %c0_21 = arith.constant 0 : index
      %c0_22 = arith.constant 0 : index
      %c0_23 = arith.constant 0 : index
      %38 = vector.load %arg6[%c0_21, %c0_22, %c0_23] : memref<1x1x1xf32, #tpu.memory_space<vmem>>, vector<1x1x1xf32>
      tpu.vector_store %arg6[%c0_21, %c0_22, %c0_23], %37 {strides = array<i32>} : memref<1x1x1xf32, #tpu.memory_space<vmem>>, vector<1x1x1xf32>,
      %39 = vector.broadcast %30 : vector<2x1x256xf32> to vector<2x4x256xf32>
      %40 = arith.mulf %26, %39 : vector<2x4x256xf32>
      %cst_24 = arith.constant dense<0.000000e+00> : vector<2x4xf32>
      %41 = vector.multi_reduction <add>, %40, %cst_24 [2] : vector<2x4x256xf32> to vector<2x4xf32>
      %c2_i32 = arith.constant 2 : i32
      %42 = arith.muli %arg1, %c2_i32 : i32
      %43 = tpu.assume_multiple %42, 2 : i32
      %44 = arith.index_cast %43 : i32 to index
      %c0_25 = arith.constant 0 : index
      %45 = vector.load %arg3[%44, %c0_25] : memref<2x4xf32, #tpu.memory_space<vmem>>, vector<2x4xf32>
      tpu.vector_store %arg3[%44, %c0_25], %41 {strides = array<i32>} : memref<2x4xf32, #tpu.memory_space<vmem>>, vector<2x4xf32>,
      %c0_i32_26 = arith.constant 0 : i32
      %46 = arith.cmpi eq, %arg1, %c0_i32_26 : i32
      %47 = arith.extui %46 : i1 to i32
      %c0_i32_27 = arith.constant 0 : i32
      %48 = arith.cmpi ne, %47, %c0_i32_27 : i32
      scf.if %48 {
        %c0_28 = arith.constant 0 : index
        %c0_29 = arith.constant 0 : index
        %c0_30 = arith.constant 0 : index
        %49 = vector.load %arg6[%c0_28, %c0_29, %c0_30] : memref<1x1x1xf32, #tpu.memory_space<vmem>>, vector<1x1x1xf32>
        %50 = vector.shape_cast %49 : vector<1x1x1xf32> to vector<1x1xf32>
        %cst_31 = arith.constant 7.62939453E-6 : f32
        %51 = vector.broadcast %cst_31 : f32 to vector<1x1xf32>
        %52 = arith.mulf %50, %51 : vector<1x1xf32>
        %c0_32 = arith.constant 0 : index
        %c0_33 = arith.constant 0 : index
        %53 = vector.load %arg3[%c0_32, %c0_33] : memref<2x4xf32, #tpu.memory_space<vmem>>, vector<2x4xf32>
        %54 = vector.broadcast %52 : vector<1x1xf32> to vector<2x4xf32>
        %55 = arith.mulf %53, %54 : vector<2x4xf32>
        %cst_34 = arith.constant dense<0.000000e+00> : vector<4xf32>
        %56 = vector.multi_reduction <add>, %55, %cst_34 [0] : vector<2x4xf32> to vector<4xf32>
        %57 = vector.shape_cast %56 : vector<4xf32> to vector<1x4xf32>
        %cst_35 = arith.constant 5.000000e-01 : f32
        %58 = vector.broadcast %cst_35 : f32 to vector<1x4xf32>
        %59 = arith.mulf %57, %58 : vector<1x4xf32>
        %60 = arith.mulf %55, %55 : vector<2x4xf32>
        %cst_36 = arith.constant dense<0.000000e+00> : vector<4xf32>
        %61 = vector.multi_reduction <add>, %60, %cst_36 [0] : vector<2x4xf32> to vector<4xf32>
        %62 = vector.shape_cast %61 : vector<4xf32> to vector<1x4xf32>
        %cst_37 = arith.constant 5.000000e-01 : f32
        %63 = vector.broadcast %cst_37 : f32 to vector<1x4xf32>
        %64 = arith.mulf %62, %63 : vector<1x4xf32>
        %65 = arith.mulf %59, %59 : vector<1x4xf32>
        %66 = arith.subf %64, %65 : vector<1x4xf32>
        %67 = vector.broadcast %59 : vector<1x4xf32> to vector<2x4xf32>
        %68 = arith.subf %55, %67 : vector<2x4xf32>
        %cst_38 = arith.constant 9.99999974E-6 : f32
        %69 = vector.broadcast %cst_38 : f32 to vector<1x4xf32>
        %70 = arith.addf %66, %69 : vector<1x4xf32>
        %71 = math.rsqrt %70 : vector<1x4xf32>
        %72 = vector.broadcast %71 : vector<1x4xf32> to vector<2x4xf32>
        %73 = arith.mulf %68, %72 : vector<2x4xf32>
        %c0_39 = arith.constant 0 : index
        %c0_40 = arith.constant 0 : index
        %74 = vector.load %arg3[%c0_39, %c0_40] : memref<2x4xf32, #tpu.memory_space<vmem>>, vector<2x4xf32>
        tpu.vector_store %arg3[%c0_39, %c0_40], %73 {strides = array<i32>} : memref<2x4xf32, #tpu.memory_space<vmem>>, vector<2x4xf32>,
      } else {
      }
    } else {
    }
    return
  }
  func.func @transform_0(%arg0: i32, %arg1: i32) -> (i32, i32, i32) {
    %c0_i32 = arith.constant 0 : i32
    %c0_i32_0 = arith.constant 0 : i32
    %c0_i32_1 = arith.constant 0 : i32
    return %arg1, %c0_i32, %c0_i32_0 : i32, i32, i32
  }
  func.func @transform_1(%arg0: i32, %arg1: i32) -> (i32, i32) {
    %c0_i32 = arith.constant 0 : i32
    %c0_i32_0 = arith.constant 0 : i32
    %c0_i32_1 = arith.constant 0 : i32
    return %c0_i32, %c0_i32_0 : i32, i32
  }
}

</mosaic_0001>

<bundles_post_ra>
// kernel: tpu_custom_call.1
= control target key start
LH: loop header
LB: loop body
LE: loop exit
PB: predicated region body
PF: predicated region fallthrough
CT: control target
= control target key end

     0   :  { %6 = vsyncpa [#allocation6], 0  ;;  %s764_s0 = inlined_call_operand.hbm [shape: f32[2,4,256], index: 0, kind: input, shape index: {}]   ;;  %s765_s1 = inlined_call_operand.hbm [shape: f32[2,4], index: 1, kind: output, shape index: {}]  }
   0x1   :  { %7 = vsyncpa [#allocation7], 0  ;;  %s673_s6 = smov 0   ;;  %s675_s7 = smov 0  }
   0x2   :  { %s677_s8 = smov 0  }
   0x3 LB: > { %s493_s9 = sadd.s32 4294967295, %s654_s8   ;;  %s25_s10 = sadd.s32 1, %s650_s7  ;;  %s654_s8 = sphi %s677_s8, %s13_s8   ;;  %s650_s7 = sphi %s675_s7, %s767_s7   ;;  %s646_s6 = sphi %s673_s6, %s766_s6  }
   0x4   : > { %p27_p0 = scmp.ge.s32.totalorder %s25_s10, 2  ;;  %p494_p1 = scmp.ge.s32.totalorder %s654_s8, 1 }
   0x5   : > { %p77_p2 = scmp.lt.s32.totalorder %s654_s8, 3  ;;  %p518_p4 = scmp.eq.s32.totalorder %s493_s9, 0 }
   0x6   : > { %s769_s10 = smov (%p27_p0, %s25_s10), 0  ;;  %s92_s13 = sshll.u32 %s764_s0, 4  ;;  %s93_s13 = int_to_ptr.hbm [resolvable:$true] %s92_s13 }
   0x7   : > { %p78_p3 = pnand %p494_p1, %p77_p2  ;;  %s656_s14 = smov [#allocation5]  }
   0x8   : > { %s94_s15 = sshll.u32 %s656_s14, 4  ;;  %s657_s16 = smov 128   ;;  %s95_s15 = int_to_ptr.vmem [resolvable:$true] %s94_s15 }
   0x9   : > { %p514_p5 = pneg %p78_p3  ;;  %s658_s17 = smov 8  }
   0xa   : > { %110 = sbr.rel (%p78_p3) target bundleno = 680 (0x2a8), region = 24 }
   0xb   : > { %p515_p6 = pnand %p518_p4, %p514_p5 }
   0xd   : > { %517 = dma.hbm_to_vmem [thread:$0]  (!%p515_p6), %s93_s13, 256, %s95_s15, [#allocation6], %s657_s16, %s657_s16, %s658_s17  }
   0xf   : > { %637 = dma.done.wait (%p518_p4), [#allocation6], 256  }
  0x10   : > { %639 = vsyncadd (%p518_p4), [#allocation6], 4294967040  ;;  %p122_p7 = scmp.eq.s32.totalorder %s646_s6, 0 }
  0x11   : > { %vm128_vm0 = vcmask (%p122_p7), 3072   ;;  %vm131_vm1 = vcmask (%p122_p7), 0   ;;  %v659_v0 = vmov (%p122_p7), 0.0  }
  0x12   : > { %127 = sbr.rel (!%p122_p7) target bundleno = 23 (0x17), region = 32  ;;  %129 = vst.msk [vmem:[#allocation2] sm:$0xf] (%p122_p7), %vm128_vm0, %v659_v0 }
  0x13   : > { %130 = vst.msk [vmem:[#allocation3] sm:$0xf] (%p122_p7), %vm128_vm0, %v659_v0 }
  0x14   : > { %132 = vst.msk [vmem:[#allocation4] sm:$0x1] (%p122_p7), %vm131_vm1, %v659_v0 }
  0x17 PF: > { %v700_v1 = vld [vmem:[#allocation5] sm:$0xff]  ;;  %v702_v2 = vld [vmem:[#allocation5 + $0x8] sm:$0xff]  ;;  %p499_p8 = scmp.ne.s32.totalorder %s646_s6, 0 }
  0x19   : > { %137 = sbr.rel (%p499_p8) target bundleno = 173 (0xad), region = 36 }
  0x1e   : > { %140 = vst [vmem:[#allocation1] ss:$2 sm:$0xff] %v700_v1  ;;  %v158_v3 = vmul.f32 %v700_v1, %v700_v1  ;;  %vm151_vm2 = vcmask 1043456   ;;  %v159_v4 = vmul.f32 %v702_v2, %v702_v2  ;;  %v179_v31 = vld [vmem:[#allocation2] sm:$0xf]  ;;  %vm186_vm3 = vcmask 3072  }
  0x1f   : > { %144 = vst [vmem:[#allocation1 + $0x10] ss:$2 sm:$0xff] %v702_v2  ;;  %v188_v34 = vld [vmem:[#allocation3] sm:$0xf] }
  0x25   : > { %v141_v5 = vld.sshfl [vmem:[#allocation1] sm:$0xff pattern:$0x75316420]  ;;  %v142_v6 = vld.sshfl [vmem:[#allocation1 + $0x8] sm:$0xff pattern:$0x75316420] }
  0x26   : > { %v145_v7 = vld.sshfl [vmem:[#allocation1 + $0x10] sm:$0xff pattern:$0x75316420]  ;;  %v146_v8 = vld.sshfl [vmem:[#allocation1 + $0x18] sm:$0xff pattern:$0x75316420] }
  0x27   : > { %v152_v9 = vsel %vm151_vm2, %v141_v5, 0.0  ;;  %v153_v10 = vsel %vm151_vm2, %v145_v7, 0.0  ;;  %v155_v11 = vsel %vm151_vm2, %v142_v6, 0.0  ;;  %v156_v12 = vsel %vm151_vm2, %v146_v8, 0.0  ;;  %162 = vst [vmem:[#allocation1] ss:$2 sm:$0xff] %v158_v3 }
  0x28   : > { %v154_v13 = vadd.f32 %v153_v10, %v152_v9  ;;  %v157_v14 = vadd.f32 %v156_v12, %v155_v11  ;;  %166 = vst [vmem:[#allocation1 + $0x10] ss:$2 sm:$0xff] %v159_v4 }
  0x2a   : > { %v180_v15 = vsel %vm151_vm2, %v154_v13, 0.0  ;;  %v181_v16 = vsel %vm151_vm2, %v157_v14, 0.0 }
  0x2b   : > { %v182_v17 = vadd.f32 %v181_v16, %v180_v15 }
  0x2d   : > { %183 = vadd.xlane.f32.xlu0 %v182_v17 }
  0x2e   : > { %v163_v18 = vld.sshfl [vmem:[#allocation1] sm:$0xff pattern:$0x75316420]  ;;  %v164_v19 = vld.sshfl [vmem:[#allocation1 + $0x8] sm:$0xff pattern:$0x75316420] }
  0x2f   : > { %v167_v20 = vld.sshfl [vmem:[#allocation1 + $0x10] sm:$0xff pattern:$0x75316420]  ;;  %v168_v21 = vld.sshfl [vmem:[#allocation1 + $0x18] sm:$0xff pattern:$0x75316420] }
  0x30   : > { %v173_v22 = vsel %vm151_vm2, %v163_v18, 0.0  ;;  %v174_v23 = vsel %vm151_vm2, %v167_v20, 0.0  ;;  %v176_v24 = vsel %vm151_vm2, %v164_v19, 0.0  ;;  %v177_v25 = vsel %vm151_vm2, %v168_v21, 0.0 }
  0x31   : > { %v175_v26 = vadd.f32 %v174_v23, %v173_v22  ;;  %v178_v27 = vadd.f32 %v177_v25, %v176_v24 }
  0x33   : > { %v189_v28 = vsel %vm151_vm2, %v175_v26, 0.0  ;;  %v190_v29 = vsel %vm151_vm2, %v178_v27, 0.0 }
  0x34   : > { %v191_v30 = vadd.f32 %v190_v29, %v189_v28 }
  0x36   : > { %192 = vadd.xlane.f32.xlu0 %v191_v30 }
  0xa0   : > { %v184_v32 = vpop.xlane.xlu0 %183 }
  0xa1   : > { %v185_v33 = vadd.f32 %v184_v32, %v179_v31 }
  0xa3   : > { %187 = vst.msk [vmem:[#allocation2] sm:$0xf] %vm186_vm3, %v185_v33 }
  0xa9   : > { %v193_v35 = vpop.xlane.xlu0 %192 }
  0xaa   : > { %v194_v36 = vadd.f32 %v193_v35, %v188_v34 }
  0xac   : > { %195 = vst.msk [vmem:[#allocation3] sm:$0xf] %vm186_vm3, %v194_v36 }
  0xad PF: > { %p500_p9 = scmp.ne.s32.totalorder %s646_s6, 1 }
  0xaf   : > { %199 = sbr.rel (%p500_p9) target bundleno = 674 (0x2a2), region = 40 }
  0xb4   : > { %v200_v37 = vld [vmem:[#allocation2] sm:$0xf]  ;;  %v202_v38 = vld [vmem:[#allocation3] sm:$0xf]  ;;  %v660_v39 = vmov 0   ;;  %vm254_vm7 = vcmask 1043456  }
  0xb5   : > { %553 = vset.pattern.permute.xlu0 %v660_v39  ;;  %v201_v40 = vmul.f32 0.001953125, %v200_v37  ;;  %v203_v41 = vmul.f32 0.001953125, %v202_v38  ;;  %v661_v52 = vmov 839922192  }
  0xb6   : > { %v222_v53 = vunpack.c.l.s4 %v661_v52 }
  0xb7   : > { %219 = vperm.xlu0 %553, %v201_v40   ;;  %v204_v42 = vmul.f32 %v201_v40, %v201_v40 }
  0xb8   : > { %v223_v55 = vunpack.c.0.s8 %v222_v53 }
  0xb9   : > { %v205_v43 = vsub.f32 %v203_v41, %v204_v42 }
  0xbb   : > { %v206_v44 = vadd.f32 1e-05, %v205_v43 }
  0xbd   : > { %554 = vrsqrt.f32 %v206_v44  ;;  %vm213_vm4 = vweird.f32 %v206_v44 }
  0xc3   : > { %v555_v45 = vpop.eup %554 }
  0xc4   : > { %v208_v46 = vmul.f32 %v555_v45, %v206_v44  ;;  %vm214_vm5 = vweird.f32 %v555_v45 }
  0xc5   : > { %vm215_vm6 = vmor %vm213_vm4, %vm214_vm5  ;;  %vm336_vm4 = vcmask 0   ;;  %vm380_vm5 = vcmask 1041409  }
  0xc6   : > { %v209_v47 = vmul.f32 %v555_v45, %v208_v46 }
  0xc8   : > { %v210_v48 = vmul.f32 0.5, %v209_v47 }
  0xca   : > { %v211_v49 = vsub.f32 1.5, %v210_v48 }
  0xcc   : > { %v212_v50 = vmul.f32 %v555_v45, %v211_v49 }
  0xce   : > { %v216_v51 = vsel %vm215_vm6, %v555_v45, %v212_v50  ;;  %vm384_vm6 = vcmask 25600  }
  0xcf   : > { %230 = vperm.xlu0 %553, %v216_v51  }
 0x129   : > { %v220_v54 = vpop.permute.xlu0 %219 }
 0x12a   : > { %v224_v56 = vperm.slane %v220_v54, %v223_v55 }
 0x12c   : > { %v226_v58 = vsub.f32 %v700_v1, %v224_v56  ;;  %v227_v59 = vsub.f32 %v702_v2, %v224_v56 }
 0x141   : > { %v231_v57 = vpop.permute.xlu0 %230 }
 0x142   : > { %v235_v60 = vperm.slane %v231_v57, %v223_v55 }
 0x144   : > { %v726_v61 = vmul.f32 %v235_v60, %v226_v58  ;;  %v728_v62 = vmul.f32 %v235_v60, %v227_v59 }
 0x146   : > { %v239_v63 = vmul.f32 %v726_v61, %v726_v61  ;;  %v240_v0 = vmul.f32 %v728_v62, %v728_v62 }
 0x148   : > { %243 = vst [vmem:[#allocation1] ss:$2 sm:$0xff] %v239_v63 }
 0x149   : > { %247 = vst [vmem:[#allocation1 + $0x10] ss:$2 sm:$0xff] %v240_v0 }
 0x14f   : > { %v244_v3 = vld.sshfl [vmem:[#allocation1] sm:$0xff pattern:$0x75316420]  ;;  %v245_v4 = vld.sshfl [vmem:[#allocation1 + $0x8] sm:$0xff pattern:$0x75316420] }
 0x150   : > { %v248_v5 = vld.sshfl [vmem:[#allocation1 + $0x10] sm:$0xff pattern:$0x75316420]  ;;  %v249_v1 = vld.sshfl [vmem:[#allocation1 + $0x18] sm:$0xff pattern:$0x75316420] }
 0x151   : > { %v269_v2 = vsel %vm254_vm7, %v248_v5, 0.0  ;;  %v276_v6 = vsel %vm254_vm7, %v249_v1, 0.0  ;;  %v255_v7 = vsel %vm254_vm7, %v244_v3, 0.0  ;;  %v262_v8 = vsel %vm254_vm7, %v245_v4, 0.0 }
 0x152   : > { %v270_v9 = vrot.slane %v269_v2, 4  ;;  %v277_v10 = vrot.slane %v276_v6, 4  ;;  %v256_v11 = vrot.slane %v255_v7, 4  ;;  %v263_v12 = vrot.slane %v262_v8, 4 }
 0x154   : > { %v271_v13 = vadd.f32 %v270_v9, %v269_v2  ;;  %v278_v14 = vadd.f32 %v277_v10, %v276_v6  ;;  %v257_v15 = vadd.f32 %v256_v11, %v255_v7  ;;  %v264_v16 = vadd.f32 %v263_v12, %v262_v8 }
 0x156   : > { %v272_v17 = vrot.slane %v271_v13, 2  ;;  %v279_v18 = vrot.slane %v278_v14, 2  ;;  %v258_v19 = vrot.slane %v257_v15, 2  ;;  %v265_v20 = vrot.slane %v264_v16, 2 }
 0x158   : > { %v273_v21 = vadd.f32 %v272_v17, %v271_v13  ;;  %v280_v22 = vadd.f32 %v279_v18, %v278_v14  ;;  %v259_v23 = vadd.f32 %v258_v19, %v257_v15  ;;  %v266_v24 = vadd.f32 %v265_v20, %v264_v16  ;;  %v333_v20 = vld [vmem:[#allocation4] sm:$0x1] }
 0x15a   : > { %v274_v25 = vrot.slane %v273_v21, 1  ;;  %v281_v26 = vrot.slane %v280_v22, 1  ;;  %v260_v27 = vrot.slane %v259_v23, 1  ;;  %v267_v28 = vrot.slane %v266_v24, 1 }
 0x15c   : > { %v275_v29 = vadd.f32 %v274_v25, %v273_v21  ;;  %v282_v30 = vadd.f32 %v281_v26, %v280_v22  ;;  %v261_v31 = vadd.f32 %v260_v27, %v259_v23  ;;  %v268_v32 = vadd.f32 %v267_v28, %v266_v24 }
 0x15d   : > { %v376_v25 = vlaneseq }
 0x15e   : > { %556 = vrsqrt.f32 %v275_v29  ;;  %vm309_vm10 = vweird.f32 %v275_v29  ;;  %vm319_vm11 = vweird.f32 %v282_v30  ;;  %vm289_vm0 = vweird.f32 %v261_v31 }
 0x15f   : > { %558 = vrsqrt.f32 %v282_v30  ;;  %vm299_vm2 = vweird.f32 %v268_v32  ;;  %v377_v26 = vand.u32 127, %v376_v25 }
 0x160   : > { %560 = vrsqrt.f32 %v261_v31 }
 0x161   : > { %562 = vrsqrt.f32 %v268_v32 }
 0x164   : > { %v557_v33 = vpop.eup %556 }
 0x165   : > { %v559_v34 = vpop.eup %558  ;;  %v304_v35 = vmul.f32 %v557_v33, %v275_v29  ;;  %vm310_vm8 = vweird.f32 %v557_v33 }
 0x166   : > { %v561_v36 = vpop.eup %560  ;;  %v314_v37 = vmul.f32 %v559_v34, %v282_v30  ;;  %vm320_vm9 = vweird.f32 %v559_v34  ;;  %vm311_vm13 = vmor %vm309_vm10, %vm310_vm8 }
 0x167   : > { %v563_v38 = vpop.eup %562  ;;  %v305_v39 = vmul.f32 %v557_v33, %v304_v35  ;;  %v284_v40 = vmul.f32 %v561_v36, %v261_v31  ;;  %vm290_vm12 = vweird.f32 %v561_v36  ;;  %vm321_vm15 = vmor %vm319_vm11, %vm320_vm9 }
 0x168   : > { %v315_v41 = vmul.f32 %v559_v34, %v314_v37  ;;  %v294_v42 = vmul.f32 %v563_v38, %v268_v32  ;;  %vm300_vm14 = vweird.f32 %v563_v38  ;;  %vm291_vm1 = vmor %vm289_vm0, %vm290_vm12 }
 0x169   : > { %v306_v43 = vmul.f32 0.5, %v305_v39  ;;  %v285_v44 = vmul.f32 %v561_v36, %v284_v40  ;;  %vm301_vm3 = vmor %vm299_vm2, %vm300_vm14 }
 0x16a   : > { %v316_v45 = vmul.f32 0.5, %v315_v41  ;;  %v295_v46 = vmul.f32 %v563_v38, %v294_v42 }
 0x16b   : > { %v307_v47 = vsub.f32 1.5, %v306_v43  ;;  %v286_v48 = vmul.f32 0.5, %v285_v44 }
 0x16c   : > { %v317_v49 = vsub.f32 1.5, %v316_v45  ;;  %v296_v50 = vmul.f32 0.5, %v295_v46 }
 0x16d   : > { %v287_v51 = vsub.f32 1.5, %v286_v48  ;;  %v308_v52 = vmul.f32 %v557_v33, %v307_v47 }
 0x16e   : > { %v318_v53 = vmul.f32 %v559_v34, %v317_v49  ;;  %v297_v54 = vsub.f32 1.5, %v296_v50 }
 0x16f   : > { %v288_v55 = vmul.f32 %v561_v36, %v287_v51  ;;  %v312_v60 = vsel %vm311_vm13, %v557_v33, %v308_v52 }
 0x170   : > { %v322_v56 = vsel %vm321_vm15, %v559_v34, %v318_v53  ;;  %v298_v57 = vmul.f32 %v563_v38, %v297_v54  ;;  %v325_v8 = vmul.f32 %v312_v60, %v275_v29 }
 0x171   : > { %v343_v58 = vrot.slane %v322_v56, 4  ;;  %v292_v59 = vsel %vm291_vm1, %v561_v36, %v288_v55  ;;  %v326_v9 = vmul.f32 %v322_v56, %v282_v30 }
 0x172   : > { %v302_v63 = vsel %vm301_vm3, %v563_v38, %v298_v57  ;;  %v323_v0 = vmul.f32 %v292_v59, %v261_v31 }
 0x173   : > { %v345_v3 = vsel %vm254_vm7, %v312_v60, %v343_v58  ;;  %v324_v4 = vmul.f32 %v302_v63, %v268_v32  ;;  %v342_v5 = vrot.slane %v302_v63, 4  ;;  %v330_v10 = vadd.f32 %v326_v9, %v325_v8 }
 0x174   : > { %v349_v1 = vmul.f32 %v345_v3, %v728_v62 }
 0x175   : > { %v327_v2 = vadd.f32 %v324_v4, %v323_v0  ;;  %v344_v6 = vsel %vm254_vm7, %v292_v59, %v342_v5 }
 0x176   : > { %356 = vst [vmem:[#allocation1 + $0x10] ss:$2 sm:$0xff] %v349_v1  ;;  %v348_v7 = vmul.f32 %v344_v6, %v726_v61 }
 0x177   : > { %328 = vadd.xlane.f32.xlu1 %v327_v2 }
 0x178   : > { %352 = vst [vmem:[#allocation1] ss:$2 sm:$0xff] %v348_v7 }
 0x17d   : > { %v357_v62 = vld.sshfl [vmem:[#allocation1 + $0x10] sm:$0xff pattern:$0x75316420]  ;;  %v358_v16 = vld.sshfl [vmem:[#allocation1 + $0x18] sm:$0xff pattern:$0x75316420] }
 0x17e   : > { %v368_v17 = vsel %vm254_vm7, %v357_v62, 0.0  ;;  %v369_v61 = vsel %vm254_vm7, %v358_v16, 0.0 }
 0x17f   : > { %331 = vadd.xlane.f32.xlu1 %v330_v10  ;;  %v353_v11 = vld.sshfl [vmem:[#allocation1] sm:$0xff pattern:$0x75316420]  ;;  %v354_v12 = vld.sshfl [vmem:[#allocation1 + $0x8] sm:$0xff pattern:$0x75316420]  ;;  %v370_v18 = vadd.f32 %v369_v61, %v368_v17 }
 0x180   : > { %v363_v13 = vsel %vm254_vm7, %v353_v11, 0.0  ;;  %v364_v14 = vsel %vm254_vm7, %v354_v12, 0.0 }
 0x181   : > { %v365_v15 = vadd.f32 %v364_v14, %v363_v13 }
 0x183   : > { %366 = vadd.xlane.f32.xlu2 %v365_v15 }
 0x18b   : > { %371 = vadd.xlane.f32.xlu2 %v370_v18 }
 0x1ea   : > { %v329_v19 = vpop.xlane.xlu1 %328 }
 0x1f2   : > { %v332_v21 = vpop.xlane.xlu1 %331 }
 0x1f3   : > { %v334_v22 = vadd.f32 %v332_v21, %v329_v19 }
 0x1f5   : > { %v335_v23 = vadd.f32 %v334_v22, %v333_v20 }
 0x1f6   : > { %v367_v24 = vpop.xlane.xlu2 %366 }
 0x1f7   : > { %337 = vst.msk [vmem:[#allocation4] sm:$0x1] %vm336_vm4, %v335_v23  ;;  %v378_v29 = vperm.slane %v367_v24, %v377_v26 }
 0x1fe   : > { %v372_v27 = vpop.xlane.xlu2 %371  ;;  %v389_v28 = vld [vmem:[#allocation4] sm:$0x1] }
 0x1ff   : > { %v379_v30 = vperm.slane %v372_v27, %v377_v26  ;;  %v390_v31 = vmul.f32 7.6293945e-06, %v389_v28 }
 0x201   : > { %v381_v32 = vsel %vm380_vm5, %v379_v30, %v378_v29  ;;  %v393_v33 = vperm.slane %v390_v31, 0 }
 0x202   : > { %385 = vst.msk [vmem:[#allocation8] sm:$0x3] %vm384_vm6, %v381_v32 }
 0x203   : > { %395 = vperm.xlu0 %553, %v393_v33  }
 0x209   : > { %v391_v34 = vld [vmem:[#allocation8] sm:$0x3] }
 0x275   : > { %v396_v35 = vpop.permute.xlu0 %395 }
 0x276   : > { %v398_v36 = vmul.f32 %v396_v35, %v391_v34 }
 0x278   : > { %v399_v37 = vsel %vm384_vm6, %v398_v36, 0.0  ;;  %v407_v38 = vmul.f32 %v398_v36, %v398_v36 }
 0x279   : > { %v400_v39 = vrot.slane %v399_v37, 4 }
 0x27a   : > { %v408_v40 = vsel %vm384_vm6, %v407_v38, 0.0 }
 0x27b   : > { %v401_v41 = vadd.f32 %v400_v39, %v399_v37  ;;  %v409_v42 = vrot.slane %v408_v40, 4 }
 0x27d   : > { %v402_v43 = vrot.slane %v401_v41, 2  ;;  %v410_v44 = vadd.f32 %v409_v42, %v408_v40 }
 0x27f   : > { %v403_v45 = vadd.f32 %v402_v43, %v401_v41  ;;  %v411_v46 = vrot.slane %v410_v44, 2 }
 0x281   : > { %v404_v47 = vrot.slane %v403_v45, 1  ;;  %v412_v48 = vadd.f32 %v411_v46, %v410_v44 }
 0x283   : > { %v405_v49 = vadd.f32 %v404_v47, %v403_v45  ;;  %v413_v50 = vrot.slane %v412_v48, 1 }
 0x285   : > { %v406_v51 = vmul.f32 0.5, %v405_v49  ;;  %v414_v52 = vadd.f32 %v413_v50, %v412_v48 }
 0x287   : > { %v415_v53 = vmul.f32 0.5, %v414_v52  ;;  %v416_v54 = vmul.f32 %v406_v51, %v406_v51  ;;  %v418_v3 = vsub.f32 %v398_v36, %v406_v51 }
 0x289   : > { %v417_v55 = vsub.f32 %v415_v53, %v416_v54 }
 0x28b   : > { %v419_v56 = vadd.f32 1e-05, %v417_v55 }
 0x28d   : > { %564 = vrsqrt.f32 %v419_v56  ;;  %vm426_vm8 = vweird.f32 %v419_v56 }
 0x293   : > { %v565_v57 = vpop.eup %564 }
 0x294   : > { %v421_v58 = vmul.f32 %v565_v57, %v419_v56  ;;  %vm427_vm7 = vweird.f32 %v565_v57 }
 0x295   : > { %vm428_vm9 = vmor %vm426_vm8, %vm427_vm7 }
 0x296   : > { %v422_v59 = vmul.f32 %v565_v57, %v421_v58 }
 0x298   : > { %v423_v60 = vmul.f32 0.5, %v422_v59 }
 0x29a   : > { %v424_v63 = vsub.f32 1.5, %v423_v60 }
 0x29c   : > { %v425_v0 = vmul.f32 %v565_v57, %v424_v63 }
 0x29e   : > { %v429_v4 = vsel %vm428_vm9, %v565_v57, %v425_v0 }
 0x29f   : > { %v430_v5 = vmul.f32 %v429_v4, %v418_v3 }
 0x2a1   : > { %431 = vst.msk [vmem:[#allocation8] sm:$0x3] %vm384_vm6, %v430_v5 }
 0x2a2 PF: > { %p520_p10 = scmp.eq.s32.totalorder %s493_s9, 1  ;;  %s440_s20 = sshll.u32 %s765_s1, 4  ;;  %s441_s20 = int_to_ptr.hbm [resolvable:$true] %s440_s20 }
 0x2a3   : > { %s662_s21 = smov [#allocation8]  }
 0x2a4   : > { %s438_s22 = sshll.u32 %s662_s21, 4  ;;  %s439_s22 = int_to_ptr.vmem [resolvable:$true] %s438_s22 }
 0x2a5   : > { %511 = dma.vmem_to_hbm [thread:$0]  (%p520_p10), %s439_s22, 32, %s441_s20, [#allocation7]  }
 0x2a6   : > { %641 = dma.done.wait (%p520_p10), [#allocation7], 32  }
 0x2a7   : > { %643 = vsyncadd (%p520_p10), [#allocation7], 4294967264 }
 0x2a8 PF: > { %s13_s8 = sadd.s32 1, %s654_s8   ;;  %s766_s6 = smov %s650_s7 }
 0x2a9   : > { %p10_p11 = scmp.ge.s32.totalorder %s13_s8, 4   ;;  %s767_s7 = smov %s769_s10 }
 0x2ab   :  { %12 = sbr.rel (!%p10_p11) target bundleno = 3 (0x3), region = 75 }
 0x2b0   :  { %454 = vsyncpa [#allocation6], 1 }
 0x2b1   :  { %456 = vsyncpa [#allocation6 + $0x1], 1 }
 0x2b2   :  { %457 = vsyncpa [#allocation7], 1 }
 0x2b3   :  { %459 = vsyncpa [#allocation7 + $0x1], 1 }

</bundles_post_ra>
